<compile_context>
chip_gen: v5e
topology: v5e:2x2
jax: 0.10.0
libtpu: 0.0.40
codegen_flags: <defaults>
</compile_context>

<pallas_src>
import jax
import jax.numpy as jnp
from jax.experimental import pallas as pl
from jax.experimental.pallas import tpu as pltpu


def _round_up(x, m):
    return ((x + m - 1) // m) * m


def pmf_kernel(ut_ref, it_ref,   # VMEM (D, TB) gathered user/item rows, batch on lanes
               bu_ref, bi_ref,   # VMEM (1, TB) gathered per-example biases (f32)
               b0_ref,           # SMEM (1,) global bias (f32)
               out_ref):         # VMEM (1, TB) lane-dense output block (f32)
    u = ut_ref[...].astype(jnp.float32)
    v = it_ref[...].astype(jnp.float32)
    # VPU multiply + sublane (axis=0) reduce -> (1, TB) lane-dense, no relayout.
    dots = jnp.sum(u * v, axis=0, keepdims=True)
    out_ref[...] = dots + bu_ref[...] + bi_ref[...] + b0_ref[0]


def pmf_forward(user_emb_tbl, item_emb_tbl, b_users, b_items, b_0,
                user_review, item_review, uid, iid):
    # user_review / item_review are accepted for interface parity with the
    # PyTorch module but are unused by PMF.forward (same as the reference).
    del user_review, item_review

    B = uid.shape[0]
    D = user_emb_tbl.shape[1]
    tbl_dtype = user_emb_tbl.dtype
    itemsize = jnp.dtype(tbl_dtype).itemsize

    LANE = 128
    # Cap TB so that the double-buffered (D, TB) u/i blocks (2 tables x 2 buffers)
    # stay under ~8 MiB — comfortable inside v5e's 16 MiB scoped-VMEM default and
    # v7x's 32 MiB scoped / 64 MiB physical budget.
    vmem_budget = 8 * 1024 * 1024
    tb_cap = vmem_budget // max(1, 4 * D * itemsize)
    tb_cap = max(LANE, (tb_cap // LANE) * LANE)
    TB = min(1024, tb_cap)

    B_pad = _round_up(max(B, 1), LANE)
    if B_pad <= TB:
        TB = B_pad                      # single full-array tile
    else:
        B_pad = _round_up(B_pad, TB)
    n_tiles = B_pad // TB

    uid_i = uid.astype(jnp.int32)
    iid_i = iid.astype(jnp.int32)
    pad = B_pad - B

    # XLA-side row gather (small-D regime per review), padded with zero rows so
    # padded lanes contribute 0 to every term; padded outputs are sliced away.
    u_rows = jnp.take(user_emb_tbl, uid_i, axis=0)          # (B, D), native dtype
    i_rows = jnp.take(item_emb_tbl, iid_i, axis=0)          # (B, D), native dtype
    u_rows = jnp.pad(u_rows, ((0, pad), (0, 0)))
    i_rows = jnp.pad(i_rows, ((0, pad), (0, 0)))
    u_t = jnp.transpose(u_rows)                              # (D, B_pad) batch-on-lanes
    i_t = jnp.transpose(i_rows)                              # (D, B_pad)

    bu = jnp.pad(jnp.take(b_users[:, 0], uid_i, axis=0).astype(jnp.float32),
                 (0, pad)).reshape(1, B_pad)
    bi = jnp.pad(jnp.take(b_items[:, 0], iid_i, axis=0).astype(jnp.float32),
                 (0, pad)).reshape(1, B_pad)
    b0 = b_0.reshape(1).astype(jnp.float32)

    cost = pl.CostEstimate(
        flops=2 * B_pad * D,
        transcendentals=0,
        bytes_accessed=2 * B_pad * D * itemsize + 3 * B_pad * 4 + 4,
    )

    out = pl.pallas_call(
        pmf_kernel,
        out_shape=jax.ShapeDtypeStruct((1, B_pad), jnp.float32),
        grid_spec=pltpu.PrefetchScalarGridSpec(
            num_scalar_prefetch=0,
            grid=(n_tiles,),
            in_specs=[
                pl.BlockSpec((D, TB), lambda t: (0, t)),      # user rows (D, TB)
                pl.BlockSpec((D, TB), lambda t: (0, t)),      # item rows (D, TB)
                pl.BlockSpec((1, TB), lambda t: (0, t)),      # b_users[uid]
                pl.BlockSpec((1, TB), lambda t: (0, t)),      # b_items[iid]
                pl.BlockSpec(memory_space=pltpu.SMEM),        # b_0 scalar
            ],
            out_specs=pl.BlockSpec((1, TB), lambda t: (0, t)),
        ),
        compiler_params=pltpu.CompilerParams(
            dimension_semantics=("parallel",)),
        cost_estimate=cost,
    )(u_t, i_t, bu, bi, b0)

    # torch: predicted.squeeze()  ((B,1) -> (B,), scalar if B == 1)
    return jnp.squeeze(out[0, :B])


if __name__ == "__main__":
    key = jax.random.PRNGKey(0)
    k1, k2, k3, k4, k5, k6, k7 = jax.random.split(key, 7)

    user_num, item_num = 10, 12
    D = 32          # config.id_embd_num
    B = 8           # batch of (uid, iid) pairs

    # Deterministic parameter init mirroring the PyTorch module's __init__:
    #   nn.Embedding default ~ N(0, 1); b_users/b_items ~ U(0, 0.1); b_0 ~ N(0, 1).
    user_emb_tbl = jax.random.normal(k1, (user_num, D), jnp.float32)
    item_emb_tbl = jax.random.normal(k2, (item_num, D), jnp.float32)
    b_users = jax.random.uniform(k3, (user_num, 1), jnp.float32, 0.0, 0.1)
    b_items = jax.random.uniform(k4, (item_num, 1), jnp.float32, 0.0, 0.1)
    b_0 = jax.random.normal(k5, (1,), jnp.float32)

    uid = jax.random.randint(k6, (B,), 0, user_num)
    iid = jax.random.randint(k7, (B,), 0, item_num)

    # Dummy review tensors (unused by forward, present for interface parity).
    user_review = jnp.zeros((B, 4), jnp.float32)
    item_review = jnp.zeros((B, 4), jnp.float32)

    out = pmf_forward(user_emb_tbl, item_emb_tbl, b_users, b_items, b_0,
                      user_review, item_review, uid, iid)
    out = jax.block_until_ready(out)

    # Pure-JAX reference for the exact PyTorch semantics.
    ref = (jnp.sum(user_emb_tbl[uid] * item_emb_tbl[iid], axis=1, keepdims=True)
           + b_users[uid] + b_items[iid] + b_0).squeeze(-1)

    assert out.shape == (B,), out.shape
    assert jnp.allclose(out, ref, atol=1e-5, rtol=1e-5), (out, ref)
    print("KERNEL_OK")
</pallas_src>

<mosaic_0001>
module attributes {stable_mosaic.version = 11 : i64} {
  func.func @pmf_kernel(%arg0: i32, %arg1: memref<32x128xf32, #tpu.memory_space<vmem>>, %arg2: memref<32x128xf32, #tpu.memory_space<vmem>>, %arg3: memref<1x128xf32, #tpu.memory_space<vmem>>, %arg4: memref<1x128xf32, #tpu.memory_space<vmem>>, %arg5: memref<1xf32, #tpu.memory_space<smem>>, %arg6: memref<1x128xf32, #tpu.memory_space<vmem>>) attributes {dimension_semantics = [#tpu.dimension_semantics<parallel>], iteration_bounds = array<i64: 1>, scalar_prefetch = 0 : i64, scratch_operands = 0 : i64, tpu.core_type = #tpu.core_type<tc>, window_params = [{transform_indices = @transform_0, window_bounds = array<i64: 32, 128>}, {transform_indices = @transform_1, window_bounds = array<i64: 32, 128>}, {transform_indices = @transform_2, window_bounds = array<i64: 1, 128>}, {transform_indices = @transform_3, window_bounds = array<i64: 1, 128>}, {transform_indices = @transform_4, window_bounds = array<i64: 1>}, {transform_indices = @transform_5, window_bounds = array<i64: 1, 128>}]} {
    %c0 = arith.constant 0 : index
    %c0_0 = arith.constant 0 : index
    %0 = vector.load %arg1[%c0, %c0_0] : memref<32x128xf32, #tpu.memory_space<vmem>>, vector<32x128xf32>
    %c0_1 = arith.constant 0 : index
    %c0_2 = arith.constant 0 : index
    %1 = vector.load %arg2[%c0_1, %c0_2] : memref<32x128xf32, #tpu.memory_space<vmem>>, vector<32x128xf32>
    %2 = arith.mulf %0, %1 : vector<32x128xf32>
    %cst = arith.constant dense<0.000000e+00> : vector<128xf32>
    %3 = vector.multi_reduction <add>, %2, %cst [0] : vector<32x128xf32> to vector<128xf32>
    %4 = vector.shape_cast %3 : vector<128xf32> to vector<1x128xf32>
    %c0_3 = arith.constant 0 : index
    %c0_4 = arith.constant 0 : index
    %5 = vector.load %arg3[%c0_3, %c0_4] : memref<1x128xf32, #tpu.memory_space<vmem>>, vector<1x128xf32>
    %6 = arith.addf %4, %5 : vector<1x128xf32>
    %c0_5 = arith.constant 0 : index
    %c0_6 = arith.constant 0 : index
    %7 = vector.load %arg4[%c0_5, %c0_6] : memref<1x128xf32, #tpu.memory_space<vmem>>, vector<1x128xf32>
    %8 = arith.addf %6, %7 : vector<1x128xf32>
    %c0_7 = arith.constant 0 : index
    %9 = memref.load %arg5[%c0_7] : memref<1xf32, #tpu.memory_space<smem>>
    %10 = vector.broadcast %9 : f32 to vector<1x128xf32>
    %11 = arith.addf %8, %10 : vector<1x128xf32>
    %c0_8 = arith.constant 0 : index
    %c0_9 = arith.constant 0 : index
    %12 = vector.load %arg6[%c0_8, %c0_9] : memref<1x128xf32, #tpu.memory_space<vmem>>, vector<1x128xf32>
    tpu.vector_store %arg6[%c0_8, %c0_9], %11 {strides = array<i32>} : memref<1x128xf32, #tpu.memory_space<vmem>>, vector<1x128xf32>,
    return
  }
  func.func @transform_0(%arg0: i32) -> (i32, i32) {
    %c0_i32 = arith.constant 0 : i32
    %c0_i32_0 = arith.constant 0 : i32
    return %c0_i32, %arg0 : i32, i32
  }
  func.func @transform_1(%arg0: i32) -> (i32, i32) {
    %c0_i32 = arith.constant 0 : i32
    %c0_i32_0 = arith.constant 0 : i32
    return %c0_i32, %arg0 : i32, i32
  }
  func.func @transform_2(%arg0: i32) -> (i32, i32) {
    %c0_i32 = arith.constant 0 : i32
    %c0_i32_0 = arith.constant 0 : i32
    return %c0_i32, %arg0 : i32, i32
  }
  func.func @transform_3(%arg0: i32) -> (i32, i32) {
    %c0_i32 = arith.constant 0 : i32
    %c0_i32_0 = arith.constant 0 : i32
    return %c0_i32, %arg0 : i32, i32
  }
  func.func @transform_4(%arg0: i32) -> i32 {
    %c0_i32 = arith.constant 0 : i32
    %c0_i32_0 = arith.constant 0 : i32
    return %c0_i32 : i32
  }
  func.func @transform_5(%arg0: i32) -> (i32, i32) {
    %c0_i32 = arith.constant 0 : i32
    %c0_i32_0 = arith.constant 0 : i32
    return %c0_i32, %arg0 : i32, i32
  }
}

</mosaic_0001>

<bundles_post_ra>
// kernel: tpu_custom_call.1
= control target key start
LH: loop header
LB: loop body
LE: loop exit
PB: predicated region body
PF: predicated region fallthrough
CT: control target
= control target key end

     0   :  { %11 = vsyncpa [#allocation4], 0  ;;  %s237_s0 = inlined_call_operand.hbm [shape: f32[32,128], index: 0, kind: input, shape index: {}]   ;;  %s238_s1 = inlined_call_operand.hbm [shape: f32[32,128], index: 1, kind: input, shape index: {}]   ;;  %s239_s2 = inlined_call_operand.vmem [shape: f32[1,128], index: 2, kind: input, shape index: {}]   ;;  %s240_s3 = inlined_call_operand.vmem [shape: f32[1,128], index: 3, kind: input, shape index: {}]   ;;  %s241_s4 = inlined_call_operand.<no memory space> [shape: f32[1], index: 4, kind: input, shape index: {}]   ;;  %s242_s5 = inlined_call_operand.hbm [shape: f32[1,128], index: 5, kind: output, shape index: {}]  }
   0x1   :  { %12 = vsyncpa [#allocation7], 0 }
   0x2   :  { %13 = vsyncpa [#allocation5], 0  ;;  %s18_s20 = sshll.u32 %s237_s0, 4  ;;  %s184_s21 = smov [#allocation3]   ;;  %s19_s20 = int_to_ptr.hbm [resolvable:$true] %s18_s20 }
   0x3   :  { %s20_s22 = sshll.u32 %s184_s21, 4  ;;  %s31_s25 = sshll.u32 %s238_s1, 4  ;;  %s21_s22 = int_to_ptr.vmem [resolvable:$true] %s20_s22  ;;  %s32_s25 = int_to_ptr.hbm [resolvable:$true] %s31_s25 }
   0x4   :  { %s185_s26 = smov 128   ;;  %s186_s27 = smov 8  }
   0x5   :  { %26 = dma.hbm_to_vmem [thread:$0]  %s19_s20, 512, %s21_s22, [#allocation4], %s185_s26, %s185_s26, %s186_s27  }
   0x6   :  { %s187_s28 = smov [#allocation6]  }
   0x7   :  { %s33_s29 = sshll.u32 %s187_s28, 4  ;;  %s34_s29 = int_to_ptr.vmem [resolvable:$true] %s33_s29 }
   0x8   :  { %39 = dma.hbm_to_vmem [thread:$0]  %s32_s25, 512, %s34_s29, [#allocation7], %s185_s26, %s185_s26, %s186_s27  }
   0x9   :  { %178 = dma.done.wait [#allocation4], 512  }
   0xa   :  { %179 = vsyncadd [#allocation4], 4294966784 }
   0xb   :  { %180 = dma.done.wait [#allocation7], 512  }
   0xc   :  { %181 = vsyncadd [#allocation7], 4294966784  ;;  %v54_v0 = vld [vmem:[#allocation3] sm:$0xff]  ;;  %v55_v1 = vld [vmem:[#allocation3 + $0x8] sm:$0xff]  ;;  %v80_v24 = vstv %s241_s4  ;;  %s188_s9 = smov [#allocation8]   ;;  %s90_s13 = sshll.u32 %s242_s5, 4  ;;  %s91_s13 = int_to_ptr.hbm [resolvable:$true] %s90_s13 }
   0xd   :  { %v56_v2 = vld [vmem:[#allocation3 + $0x10] sm:$0xff]  ;;  %v57_v3 = vld [vmem:[#allocation3 + $0x18] sm:$0xff]  ;;  %v58_v4 = vld [vmem:[#allocation6] sm:$0xff]  ;;  %s88_s10 = sshll.u32 %s188_s9, 4  ;;  %s89_s10 = int_to_ptr.vmem [resolvable:$true] %s88_s10 }
   0xe   :  { %v59_v5 = vld [vmem:[#allocation6 + $0x8] sm:$0xff]  ;;  %v60_v6 = vld [vmem:[#allocation6 + $0x10] sm:$0xff]  ;;  %v61_v7 = vld [vmem:[#allocation6 + $0x18] sm:$0xff]  ;;  %v62_v8 = vmul.f32 %v58_v4, %v54_v0 }
   0xf   :  { %v63_v9 = vmul.f32 %v59_v5, %v55_v1  ;;  %v64_v10 = vmul.f32 %v60_v6, %v56_v2  ;;  %v65_v11 = vmul.f32 %v61_v7, %v57_v3  ;;  %v75_v20 = vld [vmem:[%s239_s2] sm:$0x1] }
  0x10   :  { %v77_v22 = vld [vmem:[%s240_s3] sm:$0x1] }
  0x11   :  { %v66_v12 = vadd.f32 %v63_v9, %v62_v8 }
  0x13   :  { %v67_v13 = vadd.f32 %v66_v12, %v64_v10 }
  0x15   :  { %v68_v14 = vadd.f32 %v67_v13, %v65_v11 }
  0x17   :  { %v69_v15 = vrot.slane %v68_v14, 4 }
  0x19   :  { %v70_v16 = vadd.f32 %v69_v15, %v68_v14 }
  0x1b   :  { %v71_v17 = vrot.slane %v70_v16, 2 }
  0x1d   :  { %v72_v18 = vadd.f32 %v71_v17, %v70_v16 }
  0x1f   :  { %v73_v19 = vrot.slane %v72_v18, 1 }
  0x21   :  { %v74_v21 = vadd.f32 %v73_v19, %v72_v18 }
  0x23   :  { %v76_v23 = vadd.f32 %v75_v20, %v74_v21 }
  0x25   :  { %v78_v25 = vadd.f32 %v77_v22, %v76_v23 }
  0x27   :  { %v81_v26 = vadd.f32 %v80_v24, %v78_v25 }
  0x29   :  { %82 = vst [vmem:[#allocation8] sm:$0x1] %v81_v26 }
  0x2a   :  { %93 = dma.vmem_to_hbm [thread:$0]  %s89_s10, 16, %s91_s13, [#allocation5]  }
  0x2b   :  { %182 = dma.done.wait [#allocation5], 16  }
  0x2c   :  { %183 = vsyncadd [#allocation5], 4294967280 }
  0x2d   :  { %98 = vsyncpa [#allocation4], 1 }
  0x2e   :  { %99 = vsyncpa [#allocation7], 1 }
  0x2f   :  { %100 = vsyncpa [#allocation5], 1 }

</bundles_post_ra>
